<compile_context>
chip_gen: v7x
topology: tpu7x:2x2x1
jax: 0.10.0
libtpu: 0.0.40
codegen_flags: <defaults>
</compile_context>

<pallas_src>
import functools

import jax
import jax.numpy as jnp
from jax.experimental import pallas as pl
from jax.experimental.pallas import tpu as pltpu


def _convblock_kernel(w_ref, scale_ref, shift_ref, xa_ref, xb_ref, o_ref,
                      xcat_ref, *, kh_kw, w_p, t_m):
    """One (C_out_pad, t_m) output tile: fused im2col matmul + BN (eval) + ReLU."""
    kh, kw = kh_kw

    # Stitch current x tile and its halo tile into one contiguous lane window.
    xcat_ref[:, 0:t_m] = xa_ref[...]
    xcat_ref[:, t_m:2 * t_m] = xb_ref[...]

    acc = None
    for kk in range(kh * kw):
        r, c = divmod(kk, kw)
        off = r * w_p + c                              # static lane offset of this tap
        rhs = xcat_ref[:, pl.ds(off, t_m)]             # (C_in, t_m) shifted view, bf16
        d = jnp.dot(w_ref[kk], rhs, preferred_element_type=jnp.float32)
        acc = d if acc is None else acc + d

    # Eval-mode BatchNorm (per-channel scale/shift, f32) + ReLU, cast to bf16 on store.
    y = acc * scale_ref[...] + shift_ref[...]
    o_ref[...] = jnp.maximum(y, 0.0).astype(o_ref.dtype)


def _round_up(x, m):
    return ((x + m - 1) // m) * m


def _vmem_cap_bytes():
    """Generation-aware scoped-VMEM limit (v5e/v6e: 128 MiB, v7x: 64 MiB physical)."""
    try:
        info = pltpu.get_tpu_info()
        cap = int(getattr(info, "vmem_capacity_bytes", 0))
        if cap > 0:
            return max(32 << 20, min((cap * 3) // 4, 100 << 20))
    except Exception:
        pass
    return 48 << 20  # safe on every generation


def _pick_tile(l_total, halo, c_in, c_out_pad, n_taps, cap):
    """Largest lane tile that fits the VMEM budget, covers the halo, and (when the
    problem is big enough) leaves >= 4 grid steps for pipelining / megacore split."""
    per_lane = 16 * c_in + 12 * c_out_pad              # x streams + scratch + acc + out
    fixed = 4 * n_taps * c_out_pad * c_in + (1 << 20)  # resident (double-buffered) W
    budget = cap // 2
    cands = [c for c in (2048, 1024, 512, 256, 128)
             if c >= halo and fixed + per_lane * c <= budget]
    if not cands:
        return _round_up(max(halo, 128), 128)
    for min_steps in (4, 2, 1):
        for c in cands:                                # descending: biggest tile first
            if l_total >= min_steps * c:
                return c
    return cands[-1]


def conv_block_forward(x, weight, bias, gamma, beta, running_mean, running_var,
                       *, stride=1, padding=0, eps=1e-5):
    """ConvBlock.forward: Conv2d -> BatchNorm2d (eval) -> ReLU.  x: NCHW (f32)."""
    N, C, H, W = x.shape
    C_out, C_in, KH, KW = weight.shape
    assert C == C_in
    H_p, W_p = H + 2 * padding, W + 2 * padding
    OH = (H_p - KH) // stride + 1
    OW = (W_p - KW) // stride + 1

    C_out_pad = _round_up(C_out, 16)        # bf16 packs 16 sublanes per vreg
    L = N * H_p * W_p                       # flattened padded spatial length
    halo = (KH - 1) * W_p + (KW - 1)        # max lane shift used by any tap

    cap = _vmem_cap_bytes()
    t_m = _pick_tile(L, halo, C_in, C_out_pad, KH * KW, cap)
    nm = pl.cdiv(L, t_m)
    L_out = nm * t_m
    L_in = (nm + 1) * t_m                   # +1 halo block read by the second x spec

    # --- eval-mode BN folded to per-channel scale/shift (f32, applied in-kernel) ---
    inv_std = 1.0 / jnp.sqrt(running_var.astype(jnp.float32) + eps)
    scale = gamma.astype(jnp.float32) * inv_std
    shift = beta.astype(jnp.float32) + (
        bias.astype(jnp.float32) - running_mean.astype(jnp.float32)) * scale
    scale_p = jnp.pad(scale, (0, C_out_pad - C_out)).reshape(C_out_pad, 1)
    shift_p = jnp.pad(shift, (0, C_out_pad - C_out)).reshape(C_out_pad, 1)

    # --- one (C_out_pad, C_in) bf16 matrix per tap, kept in natural range ---
    w_taps = weight.astype(jnp.bfloat16).transpose(2, 3, 0, 1).reshape(KH * KW, C_out, C_in)
    w_taps = jnp.pad(w_taps, ((0, 0), (0, C_out_pad - C_out), (0, 0)))

    # --- x: channels-leading bf16 slab (C_in, N*H_p*W_p), zero spatial padding ---
    xp = jnp.pad(x.astype(jnp.bfloat16),
                 ((0, 0), (0, 0), (padding, padding), (padding, padding)))
    x_flat = xp.transpose(1, 0, 2, 3).reshape(C_in, L)
    x_flat = jnp.pad(x_flat, ((0, 0), (0, L_in - L)))

    kernel = functools.partial(_convblock_kernel, kh_kw=(KH, KW), w_p=W_p, t_m=t_m)

    cost = pl.CostEstimate(
        flops=2 * L_out * (C_in * KH * KW) * C_out_pad,
        transcendentals=0,
        bytes_accessed=2 * x_flat.size * 2 + w_taps.size * 2
        + scale_p.size * 4 + shift_p.size * 4 + C_out_pad * L_out * 2)

    out_flat = pl.pallas_call(
        kernel,
        out_shape=jax.ShapeDtypeStruct((C_out_pad, L_out), jnp.bfloat16),
        grid_spec=pltpu.PrefetchScalarGridSpec(
            num_scalar_prefetch=0,
            grid=(nm,),
            in_specs=[
                pl.BlockSpec((KH * KW, C_out_pad, C_in), lambda i: (0, 0, 0)),  # W (resident)
                pl.BlockSpec((C_out_pad, 1), lambda i: (0, 0)),                 # BN scale
                pl.BlockSpec((C_out_pad, 1), lambda i: (0, 0)),                 # BN shift
                pl.BlockSpec((C_in, t_m), lambda i: (0, i)),                    # x tile i
                pl.BlockSpec((C_in, t_m), lambda i: (0, i + 1)),                # halo tile
            ],
            out_specs=pl.BlockSpec((C_out_pad, t_m), lambda i: (0, i)),
            scratch_shapes=[pltpu.VMEM((C_in, 2 * t_m), jnp.bfloat16)],
        ),
        compiler_params=pltpu.CompilerParams(
            dimension_semantics=("parallel",),
            vmem_limit_bytes=int(cap)),
        cost_estimate=cost,
    )(w_taps, scale_p, shift_p, x_flat, x_flat)

    # Crop the stride-1 grid to the valid conv outputs and restore NCHW / f32
    # (only needed at the model boundary; see TODO at top of file).
    out = out_flat[:C_out, :L].reshape(C_out, N, H_p, W_p)
    out = out[:, :, 0:(OH - 1) * stride + 1:stride, 0:(OW - 1) * stride + 1:stride]
    return out.transpose(1, 0, 2, 3).astype(jnp.float32)


def _reference(x, weight, bias, gamma, beta, mean, var, *, stride, padding, eps=1e-5):
    y = jax.lax.conv_general_dilated(
        x, weight, (stride, stride), [(padding, padding), (padding, padding)],
        dimension_numbers=("NCHW", "OIHW", "NCHW"))
    y = y + bias[None, :, None, None]
    y = (y - mean[None, :, None, None]) / jnp.sqrt(var + eps)[None, :, None, None]
    y = y * gamma[None, :, None, None] + beta[None, :, None, None]
    return jnp.maximum(y, 0.0)


if __name__ == "__main__":
    # ConvBlock(in_channels=4, out_channels=8, kernel_size=3, stride=1, padding=1)
    N, C_in, H, W = 2, 4, 16, 16
    C_out, KH, KW = 8, 3, 3
    stride, padding = 1, 1

    key = jax.random.PRNGKey(0)
    kx, kw, kb, kg, kbe, km, kv = jax.random.split(key, 7)

    x = jax.random.normal(kx, (N, C_in, H, W), dtype=jnp.float32)
    weight = jax.random.normal(kw, (C_out, C_in, KH, KW), dtype=jnp.float32) * 0.1
    bias = jax.random.normal(kb, (C_out,), dtype=jnp.float32) * 0.1
    gamma = 1.0 + 0.1 * jax.random.normal(kg, (C_out,), dtype=jnp.float32)
    beta = 0.1 * jax.random.normal(kbe, (C_out,), dtype=jnp.float32)
    running_mean = 0.1 * jax.random.normal(km, (C_out,), dtype=jnp.float32)
    running_var = 1.0 + 0.1 * jax.random.uniform(kv, (C_out,), dtype=jnp.float32)

    out = conv_block_forward(x, weight, bias, gamma, beta, running_mean, running_var,
                             stride=stride, padding=padding)
    out = jax.block_until_ready(out)

    ref = _reference(x, weight, bias, gamma, beta, running_mean, running_var,
                     stride=stride, padding=padding)
    assert out.shape == (N, C_out, H, W), out.shape
    # bf16 operands + bf16 kernel output -> loosened tolerance vs the f32 reference.
    assert jnp.allclose(out, ref, atol=6e-2, rtol=6e-2), \
        float(jnp.max(jnp.abs(out - ref)))

    print("KERNEL_OK")
</pallas_src>

<mosaic_0001>
module attributes {stable_mosaic.version = 11 : i64} {
  func.func @_convblock_kernel(%arg0: i32, %arg1: memref<9x16x4xbf16, #tpu.memory_space<vmem>>, %arg2: memref<16x1xf32, #tpu.memory_space<vmem>>, %arg3: memref<16x1xf32, #tpu.memory_space<vmem>>, %arg4: memref<4x128xbf16, #tpu.memory_space<vmem>>, %arg5: memref<4x128xbf16, #tpu.memory_space<vmem>>, %arg6: memref<16x128xbf16, #tpu.memory_space<vmem>>, %arg7: memref<4x256xbf16, #tpu.memory_space<vmem>>) attributes {dimension_semantics = [#tpu.dimension_semantics<parallel>], iteration_bounds = array<i64: 6>, scalar_prefetch = 0 : i64, scratch_operands = 1 : i64, tpu.core_type = #tpu.core_type<tc>, window_params = [{pipeline_mode = #tpu.pipeline_mode<synchronous>, transform_indices = @transform_0, window_bounds = array<i64: 9, 16, 4>}, {pipeline_mode = #tpu.pipeline_mode<synchronous>, transform_indices = @transform_1, window_bounds = array<i64: 16, 1>}, {pipeline_mode = #tpu.pipeline_mode<synchronous>, transform_indices = @transform_2, window_bounds = array<i64: 16, 1>}, {transform_indices = @transform_3, window_bounds = array<i64: 4, 128>}, {transform_indices = @transform_4, window_bounds = array<i64: 4, 128>}, {transform_indices = @transform_5, window_bounds = array<i64: 16, 128>}]} {
    %c0 = arith.constant 0 : index
    %c0_0 = arith.constant 0 : index
    %0 = vector.load %arg4[%c0, %c0_0] : memref<4x128xbf16, #tpu.memory_space<vmem>>, vector<4x128xbf16>
    %c0_1 = arith.constant 0 : index
    %c0_2 = arith.constant 0 : index
    %1 = vector.load %arg7[%c0_1, %c0_2] : memref<4x256xbf16, #tpu.memory_space<vmem>>, vector<4x128xbf16>
    tpu.vector_store %arg7[%c0_1, %c0_2], %0 {strides = array<i32>} : memref<4x256xbf16, #tpu.memory_space<vmem>>, vector<4x128xbf16>,
    %c0_3 = arith.constant 0 : index
    %c0_4 = arith.constant 0 : index
    %2 = vector.load %arg5[%c0_3, %c0_4] : memref<4x128xbf16, #tpu.memory_space<vmem>>, vector<4x128xbf16>
    %c0_5 = arith.constant 0 : index
    %c128 = arith.constant 128 : index
    %3 = vector.load %arg7[%c0_5, %c128] : memref<4x256xbf16, #tpu.memory_space<vmem>>, vector<4x128xbf16>
    tpu.vector_store %arg7[%c0_5, %c128], %2 {strides = array<i32>} : memref<4x256xbf16, #tpu.memory_space<vmem>>, vector<4x128xbf16>,
    %c0_6 = arith.constant 0 : index
    %c0_7 = arith.constant 0 : index
    %4 = vector.load %arg7[%c0_6, %c0_7] : memref<4x256xbf16, #tpu.memory_space<vmem>>, vector<4x128xbf16>
    %c0_8 = arith.constant 0 : index
    %c0_9 = arith.constant 0 : index
    %c0_10 = arith.constant 0 : index
    %5 = vector.load %arg1[%c0_8, %c0_9, %c0_10] : memref<9x16x4xbf16, #tpu.memory_space<vmem>>, vector<1x16x4xbf16>
    %6 = vector.shape_cast %5 : vector<1x16x4xbf16> to vector<16x4xbf16>
    %cst = arith.constant dense<0.000000e+00> : vector<16x128xf32>
    %7 = tpu.matmul %6, %4, %cst {dimension_numbers = #tpu.dot_dimension_numbers<[1], [0], [0], [1], [0, 0, 1, 1], [], []>} : vector<16x4xbf16>, vector<4x128xbf16>, vector<16x128xf32> -> vector<16x128xf32>
    %c0_11 = arith.constant 0 : index
    %c1 = arith.constant 1 : index
    %8 = vector.load %arg7[%c0_11, %c1] : memref<4x256xbf16, #tpu.memory_space<vmem>>, vector<4x128xbf16>
    %c1_12 = arith.constant 1 : index
    %c0_13 = arith.constant 0 : index
    %c0_14 = arith.constant 0 : index
    %9 = vector.load %arg1[%c1_12, %c0_13, %c0_14] : memref<9x16x4xbf16, #tpu.memory_space<vmem>>, vector<1x16x4xbf16>
    %10 = vector.shape_cast %9 : vector<1x16x4xbf16> to vector<16x4xbf16>
    %cst_15 = arith.constant dense<0.000000e+00> : vector<16x128xf32>
    %11 = tpu.matmul %10, %8, %cst_15 {dimension_numbers = #tpu.dot_dimension_numbers<[1], [0], [0], [1], [0, 0, 1, 1], [], []>} : vector<16x4xbf16>, vector<4x128xbf16>, vector<16x128xf32> -> vector<16x128xf32>
    %12 = arith.addf %7, %11 : vector<16x128xf32>
    %c0_16 = arith.constant 0 : index
    %c2 = arith.constant 2 : index
    %13 = vector.load %arg7[%c0_16, %c2] : memref<4x256xbf16, #tpu.memory_space<vmem>>, vector<4x128xbf16>
    %c2_17 = arith.constant 2 : index
    %c0_18 = arith.constant 0 : index
    %c0_19 = arith.constant 0 : index
    %14 = vector.load %arg1[%c2_17, %c0_18, %c0_19] : memref<9x16x4xbf16, #tpu.memory_space<vmem>>, vector<1x16x4xbf16>
    %15 = vector.shape_cast %14 : vector<1x16x4xbf16> to vector<16x4xbf16>
    %cst_20 = arith.constant dense<0.000000e+00> : vector<16x128xf32>
    %16 = tpu.matmul %15, %13, %cst_20 {dimension_numbers = #tpu.dot_dimension_numbers<[1], [0], [0], [1], [0, 0, 1, 1], [], []>} : vector<16x4xbf16>, vector<4x128xbf16>, vector<16x128xf32> -> vector<16x128xf32>
    %17 = arith.addf %12, %16 : vector<16x128xf32>
    %c0_21 = arith.constant 0 : index
    %c18 = arith.constant 18 : index
    %18 = vector.load %arg7[%c0_21, %c18] : memref<4x256xbf16, #tpu.memory_space<vmem>>, vector<4x128xbf16>
    %c3 = arith.constant 3 : index
    %c0_22 = arith.constant 0 : index
    %c0_23 = arith.constant 0 : index
    %19 = vector.load %arg1[%c3, %c0_22, %c0_23] : memref<9x16x4xbf16, #tpu.memory_space<vmem>>, vector<1x16x4xbf16>
    %20 = vector.shape_cast %19 : vector<1x16x4xbf16> to vector<16x4xbf16>
    %cst_24 = arith.constant dense<0.000000e+00> : vector<16x128xf32>
    %21 = tpu.matmul %20, %18, %cst_24 {dimension_numbers = #tpu.dot_dimension_numbers<[1], [0], [0], [1], [0, 0, 1, 1], [], []>} : vector<16x4xbf16>, vector<4x128xbf16>, vector<16x128xf32> -> vector<16x128xf32>
    %22 = arith.addf %17, %21 : vector<16x128xf32>
    %c0_25 = arith.constant 0 : index
    %c19 = arith.constant 19 : index
    %23 = vector.load %arg7[%c0_25, %c19] : memref<4x256xbf16, #tpu.memory_space<vmem>>, vector<4x128xbf16>
    %c4 = arith.constant 4 : index
    %c0_26 = arith.constant 0 : index
    %c0_27 = arith.constant 0 : index
    %24 = vector.load %arg1[%c4, %c0_26, %c0_27] : memref<9x16x4xbf16, #tpu.memory_space<vmem>>, vector<1x16x4xbf16>
    %25 = vector.shape_cast %24 : vector<1x16x4xbf16> to vector<16x4xbf16>
    %cst_28 = arith.constant dense<0.000000e+00> : vector<16x128xf32>
    %26 = tpu.matmul %25, %23, %cst_28 {dimension_numbers = #tpu.dot_dimension_numbers<[1], [0], [0], [1], [0, 0, 1, 1], [], []>} : vector<16x4xbf16>, vector<4x128xbf16>, vector<16x128xf32> -> vector<16x128xf32>
    %27 = arith.addf %22, %26 : vector<16x128xf32>
    %c0_29 = arith.constant 0 : index
    %c20 = arith.constant 20 : index
    %28 = vector.load %arg7[%c0_29, %c20] : memref<4x256xbf16, #tpu.memory_space<vmem>>, vector<4x128xbf16>
    %c5 = arith.constant 5 : index
    %c0_30 = arith.constant 0 : index
    %c0_31 = arith.constant 0 : index
    %29 = vector.load %arg1[%c5, %c0_30, %c0_31] : memref<9x16x4xbf16, #tpu.memory_space<vmem>>, vector<1x16x4xbf16>
    %30 = vector.shape_cast %29 : vector<1x16x4xbf16> to vector<16x4xbf16>
    %cst_32 = arith.constant dense<0.000000e+00> : vector<16x128xf32>
    %31 = tpu.matmul %30, %28, %cst_32 {dimension_numbers = #tpu.dot_dimension_numbers<[1], [0], [0], [1], [0, 0, 1, 1], [], []>} : vector<16x4xbf16>, vector<4x128xbf16>, vector<16x128xf32> -> vector<16x128xf32>
    %32 = arith.addf %27, %31 : vector<16x128xf32>
    %c0_33 = arith.constant 0 : index
    %c36 = arith.constant 36 : index
    %33 = vector.load %arg7[%c0_33, %c36] : memref<4x256xbf16, #tpu.memory_space<vmem>>, vector<4x128xbf16>
    %c6 = arith.constant 6 : index
    %c0_34 = arith.constant 0 : index
    %c0_35 = arith.constant 0 : index
    %34 = vector.load %arg1[%c6, %c0_34, %c0_35] : memref<9x16x4xbf16, #tpu.memory_space<vmem>>, vector<1x16x4xbf16>
    %35 = vector.shape_cast %34 : vector<1x16x4xbf16> to vector<16x4xbf16>
    %cst_36 = arith.constant dense<0.000000e+00> : vector<16x128xf32>
    %36 = tpu.matmul %35, %33, %cst_36 {dimension_numbers = #tpu.dot_dimension_numbers<[1], [0], [0], [1], [0, 0, 1, 1], [], []>} : vector<16x4xbf16>, vector<4x128xbf16>, vector<16x128xf32> -> vector<16x128xf32>
    %37 = arith.addf %32, %36 : vector<16x128xf32>
    %c0_37 = arith.constant 0 : index
    %c37 = arith.constant 37 : index
    %38 = vector.load %arg7[%c0_37, %c37] : memref<4x256xbf16, #tpu.memory_space<vmem>>, vector<4x128xbf16>
    %c7 = arith.constant 7 : index
    %c0_38 = arith.constant 0 : index
    %c0_39 = arith.constant 0 : index
    %39 = vector.load %arg1[%c7, %c0_38, %c0_39] : memref<9x16x4xbf16, #tpu.memory_space<vmem>>, vector<1x16x4xbf16>
    %40 = vector.shape_cast %39 : vector<1x16x4xbf16> to vector<16x4xbf16>
    %cst_40 = arith.constant dense<0.000000e+00> : vector<16x128xf32>
    %41 = tpu.matmul %40, %38, %cst_40 {dimension_numbers = #tpu.dot_dimension_numbers<[1], [0], [0], [1], [0, 0, 1, 1], [], []>} : vector<16x4xbf16>, vector<4x128xbf16>, vector<16x128xf32> -> vector<16x128xf32>
    %42 = arith.addf %37, %41 : vector<16x128xf32>
    %c0_41 = arith.constant 0 : index
    %c38 = arith.constant 38 : index
    %43 = vector.load %arg7[%c0_41, %c38] : memref<4x256xbf16, #tpu.memory_space<vmem>>, vector<4x128xbf16>
    %c8 = arith.constant 8 : index
    %c0_42 = arith.constant 0 : index
    %c0_43 = arith.constant 0 : index
    %44 = vector.load %arg1[%c8, %c0_42, %c0_43] : memref<9x16x4xbf16, #tpu.memory_space<vmem>>, vector<1x16x4xbf16>
    %45 = vector.shape_cast %44 : vector<1x16x4xbf16> to vector<16x4xbf16>
    %cst_44 = arith.constant dense<0.000000e+00> : vector<16x128xf32>
    %46 = tpu.matmul %45, %43, %cst_44 {dimension_numbers = #tpu.dot_dimension_numbers<[1], [0], [0], [1], [0, 0, 1, 1], [], []>} : vector<16x4xbf16>, vector<4x128xbf16>, vector<16x128xf32> -> vector<16x128xf32>
    %47 = arith.addf %42, %46 : vector<16x128xf32>
    %c0_45 = arith.constant 0 : index
    %c0_46 = arith.constant 0 : index
    %48 = vector.load %arg2[%c0_45, %c0_46] : memref<16x1xf32, #tpu.memory_space<vmem>>, vector<16x1xf32>
    %49 = vector.broadcast %48 : vector<16x1xf32> to vector<16x128xf32>
    %50 = arith.mulf %47, %49 : vector<16x128xf32>
    %c0_47 = arith.constant 0 : index
    %c0_48 = arith.constant 0 : index
    %51 = vector.load %arg3[%c0_47, %c0_48] : memref<16x1xf32, #tpu.memory_space<vmem>>, vector<16x1xf32>
    %52 = vector.broadcast %51 : vector<16x1xf32> to vector<16x128xf32>
    %53 = arith.addf %50, %52 : vector<16x128xf32>
    %cst_49 = arith.constant 0.000000e+00 : f32
    %54 = vector.broadcast %cst_49 : f32 to vector<16x128xf32>
    %55 = arith.maximumf %53, %54 : vector<16x128xf32>
    %56 = arith.truncf %55 : vector<16x128xf32> to vector<16x128xbf16>
    %c0_50 = arith.constant 0 : index
    %c0_51 = arith.constant 0 : index
    %57 = vector.load %arg6[%c0_50, %c0_51] : memref<16x128xbf16, #tpu.memory_space<vmem>>, vector<16x128xbf16>
    tpu.vector_store %arg6[%c0_50, %c0_51], %56 {strides = array<i32>} : memref<16x128xbf16, #tpu.memory_space<vmem>>, vector<16x128xbf16>,
    return
  }
  func.func @transform_0(%arg0: i32) -> (i32, i32, i32) {
    %c0_i32 = arith.constant 0 : i32
    %c0_i32_0 = arith.constant 0 : i32
    %c0_i32_1 = arith.constant 0 : i32
    %c0_i32_2 = arith.constant 0 : i32
    return %c0_i32, %c0_i32_0, %c0_i32_1 : i32, i32, i32
  }
  func.func @transform_1(%arg0: i32) -> (i32, i32) {
    %c0_i32 = arith.constant 0 : i32
    %c0_i32_0 = arith.constant 0 : i32
    %c0_i32_1 = arith.constant 0 : i32
    return %c0_i32, %c0_i32_0 : i32, i32
  }
  func.func @transform_2(%arg0: i32) -> (i32, i32) {
    %c0_i32 = arith.constant 0 : i32
    %c0_i32_0 = arith.constant 0 : i32
    %c0_i32_1 = arith.constant 0 : i32
    return %c0_i32, %c0_i32_0 : i32, i32
  }
  func.func @transform_3(%arg0: i32) -> (i32, i32) {
    %c0_i32 = arith.constant 0 : i32
    %c0_i32_0 = arith.constant 0 : i32
    return %c0_i32, %arg0 : i32, i32
  }
  func.func @transform_4(%arg0: i32) -> (i32, i32) {
    %c1_i32 = arith.constant 1 : i32
    %0 = arith.addi %arg0, %c1_i32 : i32
    %c0_i32 = arith.constant 0 : i32
    %c0_i32_0 = arith.constant 0 : i32
    return %c0_i32, %0 : i32, i32
  }
  func.func @transform_5(%arg0: i32) -> (i32, i32) {
    %c0_i32 = arith.constant 0 : i32
    %c0_i32_0 = arith.constant 0 : i32
    return %c0_i32, %arg0 : i32, i32
  }
}

</mosaic_0001>

<bundles_post_ra>
// kernel: tpu_custom_call.1
= control target key start
LH: loop header
LB: loop body
LE: loop exit
PB: predicated region body
PF: predicated region fallthrough
CT: control target
= control target key end

     0   :  { %10 = vsyncpa [#allocation4], 0  ;;  %s1543_s0 = inlined_call_operand.vmem [shape: bf16[9,16,4], index: 0, kind: input, shape index: {}]   ;;  %s1544_s1 = inlined_call_operand.vmem [shape: f32[16,1], index: 1, kind: input, shape index: {}]   ;;  %s1545_s2 = inlined_call_operand.vmem [shape: f32[16,1], index: 2, kind: input, shape index: {}]   ;;  %s1546_s3 = inlined_call_operand.vmem [shape: bf16[4,896], index: 3, kind: input, shape index: {}]   ;;  %s1547_s4 = inlined_call_operand.vmem [shape: bf16[4,896], index: 4, kind: input, shape index: {}]   ;;  %s1548_s5 = inlined_call_operand.hbm [shape: bf16[16,768], index: 5, kind: output, shape index: {}]  }
   0x1   :  { %12 = vsyncpa [#allocation4 + $0x1], 0  ;;  %s1352_s18 = smov 0   ;;  %s1354_s19 = smov 0  }
   0x2   :  { %s1356_s20 = smov 0   ;;  %s1358_s21 = smov 0  }
   0x3 LB: > { %s1373_s22 = sadd.s32 4294967295, %s1305_s21   ;;  %s1015_s23 = sadd.s32 4294967294, %s1305_s21   ;;  %s1305_s21 = sphi %s1358_s21, %s1554_s21   ;;  %s1301_s20 = sphi %s1356_s20, %s1553_s20   ;;  %s1297_s19 = sphi %s1354_s19, %s1552_s19   ;;  %s1293_s18 = sphi %s1352_s18, %s1551_s18  }
   0x4   : > { %s1377_s24 = sadd.s32 1, %s1305_s21   ;;  %s142_s25 = sadd.s32 1, %s1301_s20 }
   0x5   : > { %s139_s26 = ssub.s32 %s1305_s21, %s1377_s24  ;;  %p152_p0 = scmp.ne.s32.totalorder %s1301_s20, %s1297_s19 }
   0x6   : > { %p140_p1 = scmp.eq.s32.totalorder %s139_s26, 0  ;;  %p153_p2 = scmp.eq.s32.totalorder %s1373_s22, 5 }
   0x7   : > { %p158_p3 = scmp.ne.s32.totalorder %s1297_s19, %s1293_s18  ;;  %p159_p4 = scmp.eq.s32.totalorder %s1015_s23, 5 }
   0x8   : > { %s1388_s27 = scalar_select %p140_p1, %s1301_s20, %s142_s25  }
   0x9   : > { %p1390_p5 = por %p153_p2, %p152_p0  ;;  %p1394_p6 = por %p159_p4, %p158_p3 }
   0xa   : > { %p1018_p7 = scmp.ge.s32.totalorder %s1305_s21, 1  ;;  %p202_p8 = scmp.lt.s32.totalorder %s1305_s21, 7 }
   0xc   : > { %p203_p9 = pnand %p1018_p7, %p202_p8 }
   0xd   : > { %p234_p10 = scmp.lt.s32.totalorder (!%p203_p9), %s1373_s22, 6  ;;  %s238_s30 = sadd.s32 (!%p203_p9), 1, %s1373_s22  ;;  %v1307_v2 = vmov (!%p203_p9), 0.0   ;;  %vm1308_vm0 = vmmov (!%p203_p9), 0   ;;  %v888_v5 = vld [vmem:[%s1544_s1] sm:$0xff] (!%p203_p9)  ;;  %v889_v6 = vld [vmem:[%s1544_s1 + $0x8] sm:$0xff] (!%p203_p9) }
   0xe   : > { %206 = sbr.rel (%p203_p9) target bundleno = 447 (0x1bf), region = 40  ;;  %p239_p11 = scmp.lt.s32.totalorder (!%p203_p9), %s238_s30, 6  ;;  %1095 = vmatprep.subr.bf16.mxu1 (!%p203_p9), %v1307_v2  ;;  %1119 = vmatprep.subr.bf16.mxu0 (!%p203_p9), %v1307_v2  ;;  %v1317_v7 = vmov (!%p203_p9), 0   ;;  %v903_v8 = vld [vmem:[%s1545_s2 + $0x8] sm:$0xff] (!%p203_p9)  ;;  %v902_v9 = vld [vmem:[%s1545_s2] sm:$0xff] (!%p203_p9)  ;;  %vm274_vm1 = vcmask (!%p203_p9), 1039360  }
   0xf   : > { %1097 = vmatprep.mubr.msk.bf16.mxu1 (!%p203_p9), %vm1308_vm0, %v1307_v2  ;;  %1121 = vmatprep.mubr.msk.bf16.mxu0 (!%p203_p9), %vm1308_vm0, %v1307_v2  ;;  %s1309_s15 = smov (!%p203_p9), 109   ;;  %s1310_s16 = smov (!%p203_p9), 127   ;;  %vm545_vm2 = vcmask (!%p203_p9), 891904   ;;  %vm280_vm3 = vcmask (!%p203_p9), 1041408   ;;  %vm618_vm4 = vcmask (!%p203_p9), 883712   ;;  %v1234_v19 = vld [vmem:[%s1543_s0 + $0x8] sm:$0xff] (!%p203_p9)  }
  0x10   : > { %s1311_s17 = smov (!%p203_p9), 108   ;;  %s1312_s23 = smov (!%p203_p9), 92   ;;  %1233 = vset.pattern.permute.xlu1 (!%p203_p9), %v1317_v7  ;;  %1232 = vset.pattern.permute.xlu0 (!%p203_p9), %v1317_v7  ;;  %v1235_v20 = vld [vmem:[%s1543_s0 + $0x20] sm:$0xff] (!%p203_p9)   ;;  %vm276_vm5 = vcmask (!%p203_p9), 31744   ;;  %vm691_vm6 = vcmask (!%p203_p9), 752640   ;;  %vm399_vm7 = vcmask (!%p203_p9), 1031168  }
  0x11   : > { %s1313_s25 = smov (!%p203_p9), 126   ;;  %s1314_s26 = smov (!%p203_p9), 91   ;;  %v1236_v32 = vld [vmem:[%s1543_s0] sm:$0xff] (!%p203_p9)   ;;  %v1237_v33 = vld [vmem:[%s1543_s0 + $0x28] sm:$0xff] (!%p203_p9)   ;;  %vm764_vm8 = vcmask (!%p203_p9), 744448   ;;  %vm472_vm9 = vcmask (!%p203_p9), 900096  }
  0x12   : > { %v1238_v42 = vld [vmem:[%s1543_s0 + $0x10] sm:$0xff] (!%p203_p9)   ;;  %vm837_vm10 = vcmask (!%p203_p9), 736256   ;;  %v1240_v49 = vld [vmem:[%s1543_s0 + $0x18] sm:$0xff] (!%p203_p9)   ;;  %v1242_v52 = vld [vmem:[%s1543_s0 + $0x40] sm:$0xff] (!%p203_p9)  }
  0x13   : > { %v1239_v43 = vld [vmem:[%s1543_s0 + $0x30] sm:$0xff] (!%p203_p9)   ;;  %v1241_v50 = vld [vmem:[%s1543_s0 + $0x38] sm:$0xff] (!%p203_p9)  }
  0x15   : > { %s235_s6 = scalar_select %p234_p10, %s1373_s22, 6 }
  0x16   : > { %s1556_s30 = smov (!%p239_p11, %s238_s30), 6 }
  0x17   : > { %s1020_s7 = sshll.u32 %s235_s6, 1  ;;  %s1021_s11 = sshll.u32 %s1556_s30, 1 }
  0x18   : > { %s237_s10 = scalar_lea.vmem %s1546_s3, %s1020_s7  ;;  %s242_s14 = scalar_lea.vmem %s1547_s4, %s1021_s11 }
  0x19   : > { %v245_v0 = vld [vmem:[%s237_s10] sm:$0x3]  ;;  %s1315_s30 = smov 110   ;;  %s1316_s6 = smov 90  }
  0x1a   : > { %246 = vst [vmem:[#allocation2] sm:$0x3] %v245_v0  ;;  %v247_v1 = vld [vmem:[%s242_s14] sm:$0x3] }
  0x1b   : > { %248 = vst [vmem:[#allocation2 + $0x2] sm:$0x3] %v247_v1 }
  0x21   : > { %v249_v16 = vld [vmem:[#allocation2] sm:$0x3] }
  0x22   : > { %v1042_v3 = vld.sshfl [vmem:[#allocation2] sm:$0x33 pattern:$0x76325410]  ;;  %v334_v23 = vsel %vm280_vm3, %v249_v16, 0 }
  0x23   : > { %541 = vrot.lane.b32.xlu0 %v1042_v3, %s1309_s15  ;;  %v540_v4 = vcombine.high %v1042_v3, %v1042_v3  ;;  %270 = vrot.lane.b32.xlu1 %v1042_v3, %s1310_s16 }
  0x27   : > { %543 = vrot.lane.b32.xlu0 %v540_v4, %s1309_s15  ;;  %272 = vrot.lane.b32.xlu1 %v540_v4, %s1310_s16 }
  0x2b   : > { %614 = vrot.lane.b32.xlu0 %v1042_v3, %s1311_s17  ;;  %616 = vrot.lane.b32.xlu1 %v540_v4, %s1311_s17  ;;  %s231_s17 = sand.u32 1, %s1297_s19  }
  0x2c   : > { %s1502_s9 = scalar_lea.sflag [#allocation4], %s231_s17 }
  0x2f   : > { %687 = vrot.lane.b32.xlu0 %v1042_v3, %s1312_s23  ;;  %689 = vrot.lane.b32.xlu1 %v540_v4, %s1312_s23  ;;  %s1019_s23 = sshll.u32 %s231_s17, 3 }
  0x33   : > { %395 = vrot.lane.b32.xlu0 %v1042_v3, %s1313_s25  ;;  %397 = vrot.lane.b32.xlu1 %v540_v4, %s1313_s25  ;;  %s233_s25 = scalar_lea.vmem [#allocation3], %s1019_s23 }
  0x37   : > { %760 = vrot.lane.b32.xlu0 %v1042_v3, %s1314_s26  ;;  %762 = vrot.lane.b32.xlu1 %v540_v4, %s1314_s26  ;;  %s941_s26 = sshll.u32 %s233_s25, 4  ;;  %s1495_s26 = int_to_ptr.vmem [resolvable:$true] %s941_s26 }
  0x38   : > { %s1243_s10 = scalar_lea.vmem %s1495_s26, 128 }
  0x39   : > { %p1244_p12 = scmp.ne.s32.totalorder %s1495_s26, %s1243_s10 }
  0x3b   : > { %468 = vrot.lane.b32.xlu0 %v1042_v3, %s1315_s30  ;;  %470 = vrot.lane.b32.xlu1 %v540_v4, %s1315_s30  ;;  %s1067_s30 = sshll.u32 %s1373_s22, 6  ;;  %p1245_p13 = pnand %p1244_p12, %p1390_p5 }
  0x3c   : > { %s1500_s8 = scalar_lea.hbm %s1548_s5, %s1067_s30  ;;  %s1318_s22 = smov [#allocation3]  }
  0x3d   : > { %p1246_p0 = pneg %p1245_p13  ;;  %s1247_s11 = sshll.u32 %s1318_s22, 4  ;;  %s1248_s11 = int_to_ptr.vmem [resolvable:$false] %s1247_s11 }
  0x3e   : > { %s1249_s12 = scalar_lea.vmem %s1248_s11, 256  ;;  %p1250_p1 = scmp.lt.s32.totalorder %s1495_s26, %s1248_s11 }
  0x3f   : > { %833 = vrot.lane.b32.xlu0 %v1042_v3, %s1316_s6  ;;  %835 = vrot.lane.b32.xlu1 %v540_v4, %s1316_s6  ;;  %p1251_p2 = scmp.lt.s32.totalorder %s1249_s12, %s1243_s10 }
  0x41   : > { %p1252_p3 = por %p1251_p2, %p1250_p1 }
  0x43   : > { %892 = vperm.xlu0 %1232, %v888_v5   ;;  %897 = vperm.xlu1 %1233, %v889_v6   ;;  %p1253_p4 = pnand %p1252_p3, %p1246_p0 }
  0x47   : > { %911 = vperm.xlu0 %1232, %v903_v8   ;;  %906 = vperm.xlu1 %1233, %v902_v9  }
  0x95   : > { %v542_v10 = vpop.permute.xlu0 %541  ;;  %v271_v11 = vpop.permute.xlu1 %270 }
  0x99   : > { %v544_v12 = vpop.permute.xlu0 %543  ;;  %v273_v13 = vpop.permute.xlu1 %272 }
  0x9a   : > { %v275_v14 = vsel %vm274_vm1, %v271_v11, %v273_v13  ;;  %v546_v15 = vsel %vm545_vm2, %v542_v10, %v544_v12 }
  0x9b   : > { %v282_v17 = vsel %vm280_vm3, %v275_v14, 0  ;;  %v551_v18 = vsel %vm280_vm3, %v546_v15, 0 }
  0x9c   : > { %1096 = vmatpush3.bf16.msra.mxu1 %v282_v17  ;;  %1120 = vmatpush3.bf16.msra.mxu0 %v551_v18 }
  0x9d   : > { %v615_v21 = vpop.permute.xlu0 %614  ;;  %v617_v22 = vpop.permute.xlu1 %616  ;;  %1125 = vmatprep.subr.bf16.mxu0 %v1307_v2  ;;  %1101 = vmatprep.subr.bf16.mxu1 %v1307_v2 }
  0x9e   : > { %v619_v24 = vsel %vm618_vm4, %v615_v21, %v617_v22 }
  0x9f   : > { %v624_v25 = vsel %vm280_vm3, %v619_v24, 0  ;;  %1098 = vmatmul.mubr.msk.bf16.vlgmr.msra.gmra.mrb[0].mxu1 %vm276_vm5, %v1234_v19  ;;  %1122 = vmatmul.mubr.msk.bf16.vlgmr.msra.gmra.mrb[0].mxu0 %vm276_vm5, %v1235_v20 }
  0xa0   : > { %1126 = vmatpush3.bf16.msra.mxu0 %v624_v25  ;;  %1102 = vmatpush3.bf16.msra.mxu1 %v334_v23 }
  0xa1   : > { %v688_v26 = vpop.permute.xlu0 %687  ;;  %v690_v27 = vpop.permute.xlu1 %689  ;;  %1103 = vmatprep.mubr.msk.bf16.mxu1 %vm1308_vm0, %v1307_v2  ;;  %1127 = vmatprep.mubr.msk.bf16.mxu0 %vm1308_vm0, %v1307_v2 }
  0xa2   : > { %1131 = vmatprep.subr.bf16.mxu0 %v1307_v2  ;;  %1107 = vmatprep.subr.bf16.mxu1 %v1307_v2  ;;  %v692_v30 = vsel %vm691_vm6, %v688_v26, %v690_v27 }
  0xa3   : > { %v697_v34 = vsel %vm280_vm3, %v692_v30, 0 }
  0xa5   : > { %v396_v28 = vpop.permute.xlu0 %395  ;;  %v398_v29 = vpop.permute.xlu1 %397 }
  0xa6   : > { %v400_v31 = vsel %vm399_vm7, %v396_v28, %v398_v29 }
  0xa7   : > { %v405_v35 = vsel %vm280_vm3, %v400_v31, 0 }
  0xa9   : > { %v761_v36 = vpop.permute.xlu0 %760  ;;  %v763_v37 = vpop.permute.xlu1 %762 }
  0xaa   : > { %v765_v40 = vsel %vm764_vm8, %v761_v36, %v763_v37 }
  0xab   : > { %1104 = vmatmul.mubr.msk.bf16.vlgmr.msra.gmra.mrb[0].mxu1 %vm276_vm5, %v1236_v32  ;;  %1128 = vmatmul.mubr.msk.bf16.vlgmr.msra.gmra.mrb[0].mxu0 %vm276_vm5, %v1237_v33  ;;  %v770_v44 = vsel %vm280_vm3, %v765_v40, 0 }
  0xac   : > { %1132 = vmatpush3.bf16.msra.mxu0 %v697_v34  ;;  %1108 = vmatpush3.bf16.msra.mxu1 %v405_v35 }
  0xad   : > { %1109 = vmatprep.mubr.msk.bf16.mxu1 %vm1308_vm0, %v1307_v2  ;;  %1133 = vmatprep.mubr.msk.bf16.mxu0 %vm1308_vm0, %v1307_v2  ;;  %v469_v38 = vpop.permute.xlu0 %468  ;;  %v471_v39 = vpop.permute.xlu1 %470 }
  0xae   : > { %1137 = vmatprep.subr.bf16.mxu0 %v1307_v2  ;;  %1113 = vmatprep.subr.bf16.mxu1 %v1307_v2  ;;  %v473_v41 = vsel %vm472_vm9, %v469_v38, %v471_v39 }
  0xaf   : > { %v478_v45 = vsel %vm280_vm3, %v473_v41, 0 }
  0xb1   : > { %v834_v46 = vpop.permute.xlu0 %833  ;;  %v836_v47 = vpop.permute.xlu1 %835 }
  0xb2   : > { %v838_v48 = vsel %vm837_vm10, %v834_v46, %v836_v47 }
  0xb3   : > { %v843_v51 = vsel %vm280_vm3, %v838_v48, 0 }
  0xb7   : > { %1110 = vmatmul.mubr.msk.bf16.vlgmr.msra.gmra.mrb[0].mxu1 %vm276_vm5, %v1238_v42  ;;  %1134 = vmatmul.mubr.msk.bf16.vlgmr.msra.gmra.mrb[0].mxu0 %vm276_vm5, %v1239_v43 }
  0xb8   : > { %1138 = vmatpush3.bf16.msra.mxu0 %v770_v44  ;;  %1114 = vmatpush3.bf16.msra.mxu1 %v478_v45 }
  0xb9   : > { %1115 = vmatprep.mubr.msk.bf16.mxu1 %vm1308_vm0, %v1307_v2  ;;  %1139 = vmatprep.mubr.msk.bf16.mxu0 %vm1308_vm0, %v1307_v2 }
  0xba   : > { %1143 = vmatprep.subr.bf16.mxu0 %v1307_v2 }
  0xc2   : > { %v898_v57 = vpop.permute.xlu1 %897  ;;  %v893_v58 = vpop.permute.xlu0 %892 }
  0xc3   : > { %1116 = vmatmul.mubr.msk.bf16.vlgmr.msra.gmra.mrb[0].mxu1 %vm276_vm5, %v1240_v49  ;;  %1140 = vmatmul.mubr.msk.bf16.vlgmr.msra.gmra.mrb[0].mxu0 %vm276_vm5, %v1241_v50 }
  0xc4   : > { %1144 = vmatpush3.bf16.msra.mxu0 %v843_v51  ;;  %1145 = vmatprep.mubr.msk.bf16.mxu0 %vm1308_vm0, %v1307_v2 }
  0xc6   : > { %v907_v2 = vpop.permute.xlu1 %906  ;;  %v912_v5 = vpop.permute.xlu0 %911 }
  0xcf   : > { %1146 = vmatmul.mubr.msk.bf16.vlgmr.msra.gmra.mrb[0].mxu0 %vm276_vm5, %v1242_v52 }
 0x196   : > { %v514_v53 = vpop.f32.mrb[0].mxu1 }
 0x197   : > { %v1117_v54 = vpop.f32.mrb[1].mxu1 }
 0x198   : > { %v517_v55 = vpop.f32.mrb[2].mxu1 }
 0x199   : > { %v1118_v56 = vpop.f32.mrb[3].mxu1 }
 0x1a2   : > { %v879_v59 = vpop.f32.mrb[0].mxu0 }
 0x1a3   : > { %v1149_v60 = vadd.f32 %v879_v59, %v514_v53  ;;  %v1147_v61 = vpop.f32.mrb[1].mxu0 }
 0x1a4   : > { %v882_v62 = vpop.f32.mrb[2].mxu0 }
 0x1a5   : > { %v1150_v63 = vadd.f32 %v882_v62, %v517_v55  ;;  %v1148_v0 = vpop.f32.mrb[3].mxu0  ;;  %v900_v1 = vmul.f32 %v1149_v60, %v893_v58 }
 0x1a7   : > { %v901_v3 = vmul.f32 %v1150_v63, %v898_v57  ;;  %v914_v4 = vadd.f32 %v907_v2, %v900_v1 }
 0x1a9   : > { %v915_v6 = vadd.f32 %v912_v5, %v901_v3  ;;  %v916_v8 = vmax.f32 %v914_v4, 0.0 }
 0x1ab   : > { %v917_v7 = vmax.f32 %v915_v6, 0.0 }
 0x1ad   : > { %v1075_v9 = vpack.c.bf16 %v917_v7, %v916_v8 }
 0x1af   : > { %1076 = vst [vmem:[%s233_s25] sm:$0xff] %v1075_v9  }
 0x1b0   : > { %1256 = shalt.err (!%p1253_p4)
}
 0x1b1   : > { %s1257_s13 = scalar_lea.hbm %s1500_s8, 128  ;;  %s1261_s16 = scalar_lea.hbm %s1548_s5, 768 }
 0x1b2   : > { %p1258_p7 = scmp.ne.s32.totalorder %s1500_s8, %s1257_s13  ;;  %p1262_p10 = scmp.lt.u32.totalorder %s1500_s8, %s1548_s5 }
 0x1b3   : > { %p1263_p11 = scmp.lt.u32.totalorder %s1261_s16, %s1257_s13  ;;  %p1265_p13 = scmp.lt.u32.totalorder %s1257_s13, %s1500_s8 }
 0x1b4   : > { %p1259_p8 = pnand %p1258_p7, %p1390_p5 }
 0x1b5   : > { %p1264_p12 = por %p1263_p11, %p1262_p10 }
 0x1b6   : > { %p1260_p9 = pneg %p1259_p8 }
 0x1b7   : > { %p1266_p0 = por %p1265_p13, %p1264_p12 }
 0x1b9   : > { %p1267_p1 = pnand %p1266_p0, %p1260_p9 }
 0x1bb   : > { %1270 = shalt.err (!%p1267_p1)
}
 0x1bc   : > { %s1319_s25 = smov 64   ;;  %s1320_s30 = smov 384  }
 0x1bd   : > { %s1321_s6 = smov 4  }
 0x1be   : > { %1179 = dma.vmem_to_hbm [thread:$0]  (%p1390_p5), %s1495_s26, 128, %s1500_s8, %s1502_s9, %s1319_s25, %s1320_s30, %s1321_s6  }
 0x1bf PF: > { %p1185_p2 = scmp.ge.s32.totalorder %s1305_s21, 2  ;;  %s956_s7 = sand.u32 1, %s1293_s18  }
 0x1c0   : > { %s957_s10 = scalar_lea.sflag [#allocation4], %s956_s7 }
 0x1c1   : > { %p1182_p3 = pnand %p1185_p2, %p1394_p6 }
 0x1c3   : > { %1288 = dma.done.wait (!%p1182_p3), %s957_s10, 128  }
 0x1c4   : > { %1290 = vsyncadd (!%p1182_p3), %s957_s10, 4294967168  ;;  %p15_p4 = scmp.ge.s32.totalorder %s1377_s24, 8   ;;  %s1551_s18 = smov %s1297_s19 }
 0x1c5   : > { %s1552_s19 = smov %s1301_s20  ;;  %s1553_s20 = smov %s1388_s27 }
 0x1c6   : > { %s1554_s21 = smov %s1377_s24  ;;  %17 = sbr.rel (!%p15_p4) target bundleno = 3 (0x3), region = 86 }
 0x1cd   :  { %962 = vsyncpa [#allocation4], 1 }
 0x1ce   :  { %964 = vsyncpa [#allocation4 + $0x1], 1 }

</bundles_post_ra>
